<compile_context>
chip_gen: v5e
topology: v5e:2x2
jax: 0.10.0
libtpu: 0.0.40
codegen_flags: <defaults>
</compile_context>

<pallas_src>
import math

import jax
import jax.numpy as jnp
from jax.experimental import pallas as pl
from jax.experimental.pallas import tpu as pltpu


LANE = 128  # default hidden-dim padding; use 256 on v6e/v7x (256x256 MXU)


def _round_up(x, m):
    return ((x + m - 1) // m) * m


def _sublane_multiple(dtype):
    # min second-to-last tile dim: 8 for 4-byte, 16 for 2-byte, 32 for 1-byte
    return max(8, 32 // dtype.itemsize)


def _pick_batch_tile(B, block_b, sub):
    """Coarse batch tile; prefer one that divides B (no batch padding)."""
    block_b = max(_round_up(block_b, sub), sub)
    if B <= block_b:
        return _round_up(B, sub)
    for tb in range(block_b, sub - 1, -sub):
        if B % tb == 0:
            return tb
    return block_b


# --------------------------------------------------------------------------
# Kernel: one batch tile of  out = relu(relu(x@W1+b1)@W2+b2)@W3+b3
# --------------------------------------------------------------------------
def _decoder_kernel(x_ref, w1_ref, b1_ref, w2_ref, b2_ref, w3_ref, b3_ref,
                    o_ref):
    w1 = w1_ref[...]
    cd = w1.dtype                      # compute dtype == (pre-cast) weight dtype
    x = x_ref[...].astype(cd)

    # fc1 + ReLU (single K = state_dim+action_dim dot; concat fused in wrapper)
    h1 = jnp.dot(x, w1, preferred_element_type=jnp.float32) + b1_ref[...]
    h1 = jnp.maximum(h1, 0.0)

    # fc2 + ReLU
    h2 = (jnp.dot(h1.astype(cd), w2_ref[...],
                  preferred_element_type=jnp.float32) + b2_ref[...])
    h2 = jnp.maximum(h2, 0.0)

    # fc3 (no activation)
    out = (jnp.dot(h2.astype(cd), w3_ref[...],
                   preferred_element_type=jnp.float32) + b3_ref[...])
    o_ref[...] = out.astype(o_ref.dtype)


# --------------------------------------------------------------------------
# Wrapper
# --------------------------------------------------------------------------
def decoder_forward(state, action, packed_params, *, block_b=512,
                    single_buffer_weights=True, vmem_limit_bytes=None):
    """Pallas-fused equivalent of Decoder.forward(state, action).

    `packed_params` come from `pack_params` (hidden dim lane-padded, weights
    pre-cast to the compute dtype). Returns [batch, output_dim] float32.
    """
    w1, b1, w2, b2, w3, b3 = packed_params

    B = state.shape[0]
    in_dim = w1.shape[0]
    Hp = w2.shape[0]          # padded hidden dim
    out_dim = w3.shape[1]     # unpadded output dim
    assert state.shape[1] + action.shape[1] == in_dim

    # Concat once in the wrapper (tiny B x in_dim array) so fc1 is one dot.
    x = jnp.concatenate([state, action], axis=1)

    # --- batch tiling (coarse tiles; avoid padding when a divisor exists) ---
    sub = _sublane_multiple(x.dtype)
    tb = _pick_batch_tile(B, block_b, sub)
    Bp = _round_up(B, tb)
    if Bp != B:
        x = jnp.pad(x, ((0, Bp - B), (0, 0)))
    grid = (Bp // tb,)

    # --- cost estimate + explicit VMEM budget ---
    weight_bytes = sum(a.size * a.dtype.itemsize
                       for a in (w1, b1, w2, b2, w3, b3))
    flops = 2 * Bp * (in_dim * Hp + Hp * Hp + Hp * out_dim)
    bytes_accessed = (x.size * x.dtype.itemsize + weight_bytes
                      + Bp * out_dim * 4)
    cost = pl.CostEstimate(flops=flops, transcendentals=0,
                           bytes_accessed=bytes_accessed)

    if vmem_limit_bytes is None:
        wbufs = 1 if single_buffer_weights else 2
        act_bytes = 2 * tb * in_dim * x.dtype.itemsize   # double-buffered input
        out_bytes = 2 * tb * out_dim * 4                 # double-buffered output
        scratch_bytes = 3 * tb * Hp * 4                  # h1/h2 live + spill slack
        vmem_limit_bytes = int(1.5 * (wbufs * weight_bytes + act_bytes
                                      + out_bytes + scratch_bytes)) + (2 << 20)
    vmem_limit_bytes = min(max(vmem_limit_bytes, 16 << 20), 100 << 20)

    x_spec = pl.BlockSpec((tb, in_dim), lambda i: (i, 0))
    out_spec = pl.BlockSpec((tb, out_dim), lambda i: (i, 0))

    def _weight_spec(shape, mode):
        if mode is None:
            return pl.BlockSpec(shape, lambda i: (0, 0))
        return pl.BlockSpec(shape, lambda i: (0, 0), pipeline_mode=mode)

    def _call(mode):
        in_specs = [
            x_spec,
            _weight_spec(w1.shape, mode), _weight_spec(b1.shape, mode),
            _weight_spec(w2.shape, mode), _weight_spec(b2.shape, mode),
            _weight_spec(w3.shape, mode), _weight_spec(b3.shape, mode),
        ]
        return pl.pallas_call(
            _decoder_kernel,
            out_shape=jax.ShapeDtypeStruct((Bp, out_dim), jnp.float32),
            grid=grid,
            in_specs=in_specs,
            out_specs=out_spec,
            compiler_params=pltpu.CompilerParams(
                dimension_semantics=("parallel",),   # megacore sharding on v7x
                vmem_limit_bytes=vmem_limit_bytes),
            cost_estimate=cost,
        )(x, w1, b1, w2, b2, w3, b3)

    if single_buffer_weights:
        try:
            # Constant-index weights: one VMEM buffer is enough.
            out_padded = _call(pl.Buffered(1))
        except Exception:
            # This JAX/Mosaic build rejects single-buffered inputs; fall back.
            out_padded = _call(None)
    else:
        out_padded = _call(None)

    return out_padded if Bp == B else out_padded[:B]


# --------------------------------------------------------------------------
# Parameters
# --------------------------------------------------------------------------
def init_raw_params(key, state_dim, action_dim, output_dim, hidden_dim):
    """nn.Linear-style init; weights [in, out], biases [1, out] (unpadded)."""
    def linear(k, fan_in, fan_out):
        kw, kb = jax.random.split(k)
        bound = 1.0 / math.sqrt(fan_in)
        w = jax.random.uniform(kw, (fan_in, fan_out), jnp.float32, -bound, bound)
        b = jax.random.uniform(kb, (1, fan_out), jnp.float32, -bound, bound)
        return w, b

    k1, k2, k3 = jax.random.split(key, 3)
    w1, b1 = linear(k1, state_dim + action_dim, hidden_dim)
    w2, b2 = linear(k2, hidden_dim, hidden_dim)
    w3, b3 = linear(k3, hidden_dim, output_dim)
    return (w1, b1, w2, b2, w3, b3)


def pack_params(raw_params, *, hidden_multiple=LANE, compute_dtype=jnp.float32):
    """Zero-pad the hidden dim to a lane multiple (128 default; pass 256 on
    v6e/v7x to fill the 256x256 MXU) and pre-cast weights to compute_dtype.
    Zero padding is numerically exact (padded units stay 0 through ReLU).
    Output dim is left unpadded; biases stay f32 for the f32 epilogue."""
    w1, b1, w2, b2, w3, b3 = raw_params
    hidden_dim = w2.shape[0]
    Hp = _round_up(hidden_dim, hidden_multiple)

    def pad(x, rows, cols):
        return jnp.pad(x, ((0, rows - x.shape[0]), (0, cols - x.shape[1])))

    w1p = pad(w1, w1.shape[0], Hp).astype(compute_dtype)
    b1p = pad(b1, 1, Hp).astype(jnp.float32)
    w2p = pad(w2, Hp, Hp).astype(compute_dtype)
    b2p = pad(b2, 1, Hp).astype(jnp.float32)
    w3p = pad(w3, Hp, w3.shape[1]).astype(compute_dtype)
    b3p = b3.astype(jnp.float32)
    return (w1p, b1p, w2p, b2p, w3p, b3p)


def decoder_reference(state, action, raw_params):
    """Plain-JAX reference (unpadded params) for correctness checking."""
    w1, b1, w2, b2, w3, b3 = raw_params
    x = jnp.concatenate([state, action], axis=1)
    h1 = jnp.maximum(x @ w1 + b1, 0.0)
    h2 = jnp.maximum(h1 @ w2 + b2, 0.0)
    return h2 @ w3 + b3


# --------------------------------------------------------------------------
# Demo / correctness check
# --------------------------------------------------------------------------
if __name__ == "__main__":
    state_dim, action_dim, hidden_dim, output_dim = 12, 4, 32, 16

    key = jax.random.PRNGKey(0)
    kp, ks, ka, ks2, ka2 = jax.random.split(key, 5)

    raw = init_raw_params(kp, state_dim, action_dim, output_dim, hidden_dim)

    # --- small batch, f32 weights (exact vs reference) ---
    batch = 8
    state = jax.random.normal(ks, (batch, state_dim), jnp.float32)
    action = jax.random.normal(ka, (batch, action_dim), jnp.float32)
    ref = decoder_reference(state, action, raw)

    packed_f32 = pack_params(raw)
    out = jax.block_until_ready(decoder_forward(state, action, packed_f32))
    assert out.shape == (batch, output_dim)
    assert jnp.allclose(out, ref, atol=1e-5, rtol=1e-5), "f32 mismatch vs reference"

    # --- bf16 pre-cast weights (MXU-native on v5e/v6e/v7x), f32 accumulate ---
    packed_bf16 = pack_params(raw, compute_dtype=jnp.bfloat16)
    out_bf16 = jax.block_until_ready(decoder_forward(state, action, packed_bf16))
    assert jnp.allclose(out_bf16, ref, atol=5e-2, rtol=5e-2), "bf16 mismatch vs reference"

    # --- larger irregular batch: multi-step grid + divisor tile (no padding) ---
    batch2 = 1000
    state2 = jax.random.normal(ks2, (batch2, state_dim), jnp.float32)
    action2 = jax.random.normal(ka2, (batch2, action_dim), jnp.float32)
    ref2 = decoder_reference(state2, action2, raw)
    out2 = jax.block_until_ready(
        decoder_forward(state2, action2, packed_f32, block_b=512))
    assert out2.shape == (batch2, output_dim)
    assert jnp.allclose(out2, ref2, atol=1e-4, rtol=1e-4), "large-batch mismatch"

    print("KERNEL_OK")
</pallas_src>

<mosaic_0001>
module attributes {stable_mosaic.version = 11 : i64} {
  func.func @_decoder_kernel(%arg0: i32, %arg1: memref<8x16xf32, #tpu.memory_space<vmem>>, %arg2: memref<16x128xf32, #tpu.memory_space<vmem>>, %arg3: memref<1x128xf32, #tpu.memory_space<vmem>>, %arg4: memref<128x128xf32, #tpu.memory_space<vmem>>, %arg5: memref<1x128xf32, #tpu.memory_space<vmem>>, %arg6: memref<128x16xf32, #tpu.memory_space<vmem>>, %arg7: memref<1x16xf32, #tpu.memory_space<vmem>>, %arg8: memref<8x16xf32, #tpu.memory_space<vmem>>) attributes {dimension_semantics = [#tpu.dimension_semantics<parallel>], iteration_bounds = array<i64: 1>, scalar_prefetch = 0 : i64, scratch_operands = 0 : i64, tpu.core_type = #tpu.core_type<tc>, window_params = [{transform_indices = @transform_0, window_bounds = array<i64: 8, 16>}, {pipeline_mode = #tpu.pipeline_mode<synchronous>, transform_indices = @transform_1, window_bounds = array<i64: 16, 128>}, {pipeline_mode = #tpu.pipeline_mode<synchronous>, transform_indices = @transform_2, window_bounds = array<i64: 1, 128>}, {pipeline_mode = #tpu.pipeline_mode<synchronous>, transform_indices = @transform_3, window_bounds = array<i64: 128, 128>}, {pipeline_mode = #tpu.pipeline_mode<synchronous>, transform_indices = @transform_4, window_bounds = array<i64: 1, 128>}, {pipeline_mode = #tpu.pipeline_mode<synchronous>, transform_indices = @transform_5, window_bounds = array<i64: 128, 16>}, {pipeline_mode = #tpu.pipeline_mode<synchronous>, transform_indices = @transform_6, window_bounds = array<i64: 1, 16>}, {transform_indices = @transform_7, window_bounds = array<i64: 8, 16>}]} {
    %c0 = arith.constant 0 : index
    %c0_0 = arith.constant 0 : index
    %0 = vector.load %arg2[%c0, %c0_0] : memref<16x128xf32, #tpu.memory_space<vmem>>, vector<16x128xf32>
    %c0_1 = arith.constant 0 : index
    %c0_2 = arith.constant 0 : index
    %1 = vector.load %arg1[%c0_1, %c0_2] : memref<8x16xf32, #tpu.memory_space<vmem>>, vector<8x16xf32>
    %cst = arith.constant dense<0.000000e+00> : vector<8x128xf32>
    %2 = tpu.matmul %1, %0, %cst {dimension_numbers = #tpu.dot_dimension_numbers<[1], [0], [0], [1], [0, 0, 1, 1], [], []>} : vector<8x16xf32>, vector<16x128xf32>, vector<8x128xf32> -> vector<8x128xf32>
    %c0_3 = arith.constant 0 : index
    %c0_4 = arith.constant 0 : index
    %3 = vector.load %arg3[%c0_3, %c0_4] : memref<1x128xf32, #tpu.memory_space<vmem>>, vector<1x128xf32>
    %4 = vector.broadcast %3 : vector<1x128xf32> to vector<8x128xf32>
    %5 = arith.addf %2, %4 : vector<8x128xf32>
    %cst_5 = arith.constant 0.000000e+00 : f32
    %6 = vector.broadcast %cst_5 : f32 to vector<8x128xf32>
    %7 = arith.maximumf %5, %6 : vector<8x128xf32>
    %c0_6 = arith.constant 0 : index
    %c0_7 = arith.constant 0 : index
    %8 = vector.load %arg4[%c0_6, %c0_7] : memref<128x128xf32, #tpu.memory_space<vmem>>, vector<128x128xf32>
    %cst_8 = arith.constant dense<0.000000e+00> : vector<8x128xf32>
    %9 = tpu.matmul %7, %8, %cst_8 {dimension_numbers = #tpu.dot_dimension_numbers<[1], [0], [0], [1], [0, 0, 1, 1], [], []>} : vector<8x128xf32>, vector<128x128xf32>, vector<8x128xf32> -> vector<8x128xf32>
    %c0_9 = arith.constant 0 : index
    %c0_10 = arith.constant 0 : index
    %10 = vector.load %arg5[%c0_9, %c0_10] : memref<1x128xf32, #tpu.memory_space<vmem>>, vector<1x128xf32>
    %11 = vector.broadcast %10 : vector<1x128xf32> to vector<8x128xf32>
    %12 = arith.addf %9, %11 : vector<8x128xf32>
    %cst_11 = arith.constant 0.000000e+00 : f32
    %13 = vector.broadcast %cst_11 : f32 to vector<8x128xf32>
    %14 = arith.maximumf %12, %13 : vector<8x128xf32>
    %c0_12 = arith.constant 0 : index
    %c0_13 = arith.constant 0 : index
    %15 = vector.load %arg6[%c0_12, %c0_13] : memref<128x16xf32, #tpu.memory_space<vmem>>, vector<128x16xf32>
    %cst_14 = arith.constant dense<0.000000e+00> : vector<8x16xf32>
    %16 = tpu.matmul %14, %15, %cst_14 {dimension_numbers = #tpu.dot_dimension_numbers<[1], [0], [0], [1], [0, 0, 1, 1], [], []>} : vector<8x128xf32>, vector<128x16xf32>, vector<8x16xf32> -> vector<8x16xf32>
    %c0_15 = arith.constant 0 : index
    %c0_16 = arith.constant 0 : index
    %17 = vector.load %arg7[%c0_15, %c0_16] : memref<1x16xf32, #tpu.memory_space<vmem>>, vector<1x16xf32>
    %18 = vector.broadcast %17 : vector<1x16xf32> to vector<8x16xf32>
    %19 = arith.addf %16, %18 : vector<8x16xf32>
    %c0_17 = arith.constant 0 : index
    %c0_18 = arith.constant 0 : index
    %20 = vector.load %arg8[%c0_17, %c0_18] : memref<8x16xf32, #tpu.memory_space<vmem>>, vector<8x16xf32>
    tpu.vector_store %arg8[%c0_17, %c0_18], %19 {strides = array<i32>} : memref<8x16xf32, #tpu.memory_space<vmem>>, vector<8x16xf32>,
    return
  }
  func.func @transform_0(%arg0: i32) -> (i32, i32) {
    %c0_i32 = arith.constant 0 : i32
    %c0_i32_0 = arith.constant 0 : i32
    return %arg0, %c0_i32 : i32, i32
  }
  func.func @transform_1(%arg0: i32) -> (i32, i32) {
    %c0_i32 = arith.constant 0 : i32
    %c0_i32_0 = arith.constant 0 : i32
    %c0_i32_1 = arith.constant 0 : i32
    return %c0_i32, %c0_i32_0 : i32, i32
  }
  func.func @transform_2(%arg0: i32) -> (i32, i32) {
    %c0_i32 = arith.constant 0 : i32
    %c0_i32_0 = arith.constant 0 : i32
    %c0_i32_1 = arith.constant 0 : i32
    return %c0_i32, %c0_i32_0 : i32, i32
  }
  func.func @transform_3(%arg0: i32) -> (i32, i32) {
    %c0_i32 = arith.constant 0 : i32
    %c0_i32_0 = arith.constant 0 : i32
    %c0_i32_1 = arith.constant 0 : i32
    return %c0_i32, %c0_i32_0 : i32, i32
  }
  func.func @transform_4(%arg0: i32) -> (i32, i32) {
    %c0_i32 = arith.constant 0 : i32
    %c0_i32_0 = arith.constant 0 : i32
    %c0_i32_1 = arith.constant 0 : i32
    return %c0_i32, %c0_i32_0 : i32, i32
  }
  func.func @transform_5(%arg0: i32) -> (i32, i32) {
    %c0_i32 = arith.constant 0 : i32
    %c0_i32_0 = arith.constant 0 : i32
    %c0_i32_1 = arith.constant 0 : i32
    return %c0_i32, %c0_i32_0 : i32, i32
  }
  func.func @transform_6(%arg0: i32) -> (i32, i32) {
    %c0_i32 = arith.constant 0 : i32
    %c0_i32_0 = arith.constant 0 : i32
    %c0_i32_1 = arith.constant 0 : i32
    return %c0_i32, %c0_i32_0 : i32, i32
  }
  func.func @transform_7(%arg0: i32) -> (i32, i32) {
    %c0_i32 = arith.constant 0 : i32
    %c0_i32_0 = arith.constant 0 : i32
    return %arg0, %c0_i32 : i32, i32
  }
}

module attributes {stable_mosaic.version = 11 : i64} {
  func.func @_decoder_kernel(%arg0: i32, %arg1: memref<8x16xf32, #tpu.memory_space<vmem>>, %arg2: memref<16x128xf32, #tpu.memory_space<vmem>>, %arg3: memref<1x128xf32, #tpu.memory_space<vmem>>, %arg4: memref<128x128xf32, #tpu.memory_space<vmem>>, %arg5: memref<1x128xf32, #tpu.memory_space<vmem>>, %arg6: memref<128x16xf32, #tpu.memory_space<vmem>>, %arg7: memref<1x16xf32, #tpu.memory_space<vmem>>, %arg8: memref<8x16xf32, #tpu.memory_space<vmem>>) attributes {dimension_semantics = [#tpu.dimension_semantics<parallel>], iteration_bounds = array<i64: 1>, scalar_prefetch = 0 : i64, scratch_operands = 0 : i64, tpu.core_type = #tpu.core_type<tc>, window_params = [{transform_indices = @transform_0, window_bounds = array<i64: 8, 16>}, {pipeline_mode = #tpu.pipeline_mode<synchronous>, transform_indices = @transform_1, window_bounds = array<i64: 16, 128>}, {pipeline_mode = #tpu.pipeline_mode<synchronous>, transform_indices = @transform_2, window_bounds = array<i64: 1, 128>}, {pipeline_mode = #tpu.pipeline_mode<synchronous>, transform_indices = @transform_3, window_bounds = array<i64: 128, 128>}, {pipeline_mode = #tpu.pipeline_mode<synchronous>, transform_indices = @transform_4, window_bounds = array<i64: 1, 128>}, {pipeline_mode = #tpu.pipeline_mode<synchronous>, transform_indices = @transform_5, window_bounds = array<i64: 128, 16>}, {pipeline_mode = #tpu.pipeline_mode<synchronous>, transform_indices = @transform_6, window_bounds = array<i64: 1, 16>}, {transform_indices = @transform_7, window_bounds = array<i64: 8, 16>}]} {
    %c0 = arith.constant 0 : index
    %c0_0 = arith.constant 0 : index
    %0 = vector.load %arg2[%c0, %c0_0] : memref<16x128xf32, #tpu.memory_space<vmem>>, vector<16x128xf32>
    %c0_1 = arith.constant 0 : index
    %c0_2 = arith.constant 0 : index
    %1 = vector.load %arg1[%c0_1, %c0_2] : memref<8x16xf32, #tpu.memory_space<vmem>>, vector<8x16xf32>
    %cst = arith.constant dense<0.000000e+00> : vector<8x128xf32>
    %2 = tpu.matmul %1, %0, %cst {dimension_numbers = #tpu.dot_dimension_numbers<[1], [0], [0], [1], [0, 0, 1, 1], [], []>} : vector<8x16xf32>, vector<16x128xf32>, vector<8x128xf32> -> vector<8x128xf32>
    %c0_3 = arith.constant 0 : index
    %c0_4 = arith.constant 0 : index
    %3 = vector.load %arg3[%c0_3, %c0_4] : memref<1x128xf32, #tpu.memory_space<vmem>>, vector<1x128xf32>
    %4 = vector.broadcast %3 : vector<1x128xf32> to vector<8x128xf32>
    %5 = arith.addf %2, %4 : vector<8x128xf32>
    %cst_5 = arith.constant 0.000000e+00 : f32
    %6 = vector.broadcast %cst_5 : f32 to vector<8x128xf32>
    %7 = arith.maximumf %5, %6 : vector<8x128xf32>
    %c0_6 = arith.constant 0 : index
    %c0_7 = arith.constant 0 : index
    %8 = vector.load %arg4[%c0_6, %c0_7] : memref<128x128xf32, #tpu.memory_space<vmem>>, vector<128x128xf32>
    %cst_8 = arith.constant dense<0.000000e+00> : vector<8x128xf32>
    %9 = tpu.matmul %7, %8, %cst_8 {dimension_numbers = #tpu.dot_dimension_numbers<[1], [0], [0], [1], [0, 0, 1, 1], [], []>} : vector<8x128xf32>, vector<128x128xf32>, vector<8x128xf32> -> vector<8x128xf32>
    %c0_9 = arith.constant 0 : index
    %c0_10 = arith.constant 0 : index
    %10 = vector.load %arg5[%c0_9, %c0_10] : memref<1x128xf32, #tpu.memory_space<vmem>>, vector<1x128xf32>
    %11 = vector.broadcast %10 : vector<1x128xf32> to vector<8x128xf32>
    %12 = arith.addf %9, %11 : vector<8x128xf32>
    %cst_11 = arith.constant 0.000000e+00 : f32
    %13 = vector.broadcast %cst_11 : f32 to vector<8x128xf32>
    %14 = arith.maximumf %12, %13 : vector<8x128xf32>
    %c0_12 = arith.constant 0 : index
    %c0_13 = arith.constant 0 : index
    %15 = vector.load %arg6[%c0_12, %c0_13] : memref<128x16xf32, #tpu.memory_space<vmem>>, vector<128x16xf32>
    %cst_14 = arith.constant dense<0.000000e+00> : vector<8x16xf32>
    %16 = tpu.matmul %14, %15, %cst_14 {dimension_numbers = #tpu.dot_dimension_numbers<[1], [0], [0], [1], [0, 0, 1, 1], [], []>} : vector<8x128xf32>, vector<128x16xf32>, vector<8x16xf32> -> vector<8x16xf32>
    %c0_15 = arith.constant 0 : index
    %c0_16 = arith.constant 0 : index
    %17 = vector.load %arg7[%c0_15, %c0_16] : memref<1x16xf32, #tpu.memory_space<vmem>>, vector<1x16xf32>
    %18 = vector.broadcast %17 : vector<1x16xf32> to vector<8x16xf32>
    %19 = arith.addf %16, %18 : vector<8x16xf32>
    %c0_17 = arith.constant 0 : index
    %c0_18 = arith.constant 0 : index
    %20 = vector.load %arg8[%c0_17, %c0_18] : memref<8x16xf32, #tpu.memory_space<vmem>>, vector<8x16xf32>
    tpu.vector_store %arg8[%c0_17, %c0_18], %19 {strides = array<i32>} : memref<8x16xf32, #tpu.memory_space<vmem>>, vector<8x16xf32>,
    return
  }
  func.func @transform_0(%arg0: i32) -> (i32, i32) {
    %c0_i32 = arith.constant 0 : i32
    %c0_i32_0 = arith.constant 0 : i32
    return %arg0, %c0_i32 : i32, i32
  }
  func.func @transform_1(%arg0: i32) -> (i32, i32) {
    %c0_i32 = arith.constant 0 : i32
    %c0_i32_0 = arith.constant 0 : i32
    %c0_i32_1 = arith.constant 0 : i32
    return %c0_i32, %c0_i32_0 : i32, i32
  }
  func.func @transform_2(%arg0: i32) -> (i32, i32) {
    %c0_i32 = arith.constant 0 : i32
    %c0_i32_0 = arith.constant 0 : i32
    %c0_i32_1 = arith.constant 0 : i32
    return %c0_i32, %c0_i32_0 : i32, i32
  }
  func.func @transform_3(%arg0: i32) -> (i32, i32) {
    %c0_i32 = arith.constant 0 : i32
    %c0_i32_0 = arith.constant 0 : i32
    %c0_i32_1 = arith.constant 0 : i32
    return %c0_i32, %c0_i32_0 : i32, i32
  }
  func.func @transform_4(%arg0: i32) -> (i32, i32) {
    %c0_i32 = arith.constant 0 : i32
    %c0_i32_0 = arith.constant 0 : i32
    %c0_i32_1 = arith.constant 0 : i32
    return %c0_i32, %c0_i32_0 : i32, i32
  }
  func.func @transform_5(%arg0: i32) -> (i32, i32) {
    %c0_i32 = arith.constant 0 : i32
    %c0_i32_0 = arith.constant 0 : i32
    %c0_i32_1 = arith.constant 0 : i32
    return %c0_i32, %c0_i32_0 : i32, i32
  }
  func.func @transform_6(%arg0: i32) -> (i32, i32) {
    %c0_i32 = arith.constant 0 : i32
    %c0_i32_0 = arith.constant 0 : i32
    %c0_i32_1 = arith.constant 0 : i32
    return %c0_i32, %c0_i32_0 : i32, i32
  }
  func.func @transform_7(%arg0: i32) -> (i32, i32) {
    %c0_i32 = arith.constant 0 : i32
    %c0_i32_0 = arith.constant 0 : i32
    return %arg0, %c0_i32 : i32, i32
  }
}

</mosaic_0001>

<bundles_post_ra>
// kernel: tpu_custom_call.1
= control target key start
LH: loop header
LB: loop body
LE: loop exit
PB: predicated region body
PF: predicated region fallthrough
CT: control target
= control target key end

     0   :  { %12 = vsyncpa [#allocation3], 0  ;;  %s391_s0 = inlined_call_operand.hbm [shape: f32[8,16], index: 0, kind: input, shape index: {}]   ;;  %s392_s1 = inlined_call_operand.vmem [shape: f32[16,128], index: 1, kind: input, shape index: {}]   ;;  %s393_s2 = inlined_call_operand.vmem [shape: f32[1,128], index: 2, kind: input, shape index: {}]   ;;  %s394_s3 = inlined_call_operand.vmem [shape: f32[128,128], index: 3, kind: input, shape index: {}]   ;;  %s395_s4 = inlined_call_operand.vmem [shape: f32[1,128], index: 4, kind: input, shape index: {}]   ;;  %s396_s5 = inlined_call_operand.vmem [shape: f32[128,16], index: 5, kind: input, shape index: {}]   ;;  %s397_s6 = inlined_call_operand.vmem [shape: f32[1,16], index: 6, kind: input, shape index: {}]   ;;  %s398_s7 = inlined_call_operand.hbm [shape: f32[8,16], index: 7, kind: output, shape index: {}]  }
   0x1   :  { %13 = vsyncpa [#allocation4], 0  ;;  %s19_s26 = sshll.u32 %s391_s0, 4  ;;  %s230_s27 = smov [#allocation2]   ;;  %s20_s26 = int_to_ptr.hbm [resolvable:$true] %s19_s26 }
   0x2   :  { %s21_s28 = sshll.u32 %s230_s27, 4  ;;  %s22_s28 = int_to_ptr.vmem [resolvable:$true] %s21_s28 }
   0x3   :  { %24 = dma.hbm_to_vmem [thread:$0]  %s20_s26, 128, %s22_s28, [#allocation3]  }
   0x4   :  { %226 = dma.done.wait [#allocation3], 128  }
   0x5   :  { %227 = vsyncadd [#allocation3], 4294967168  ;;  %v42_v0 = vld [vmem:[%s392_s1 + $0x8] sm:$0xff]  ;;  %v41_v1 = vld [vmem:[%s392_s1] sm:$0xff]  ;;  %vm48_vm0 = vcmask 130048   ;;  %s231_s25 = smov [#allocation5]  }
   0x6   :  { %66 = vmatpush.msra.mxu0 %v42_v0  ;;  %v43_v2 = vld [vmem:[#allocation2] sm:$0xff]  ;;  %v88_v3 = vld [vmem:[%s394_s3 + $0x78] sm:$0xff]  ;;  %v87_v4 = vld [vmem:[%s394_s3 + $0x70] sm:$0xff]  ;;  %s160_s26 = sshll.u32 %s231_s25, 4  ;;  %s162_s29 = sshll.u32 %s398_s7, 4  ;;  %s161_s26 = int_to_ptr.vmem [resolvable:$true] %s160_s26  ;;  %s163_s29 = int_to_ptr.hbm [resolvable:$true] %s162_s29 }
   0x7   :  { %93 = vmatpush.msra.mxu1 %v88_v3  ;;  %v86_v5 = vld [vmem:[%s394_s3 + $0x68] sm:$0xff]  ;;  %v85_v6 = vld [vmem:[%s394_s3 + $0x60] sm:$0xff]  ;;  %v84_v7 = vld [vmem:[%s394_s3 + $0x58] sm:$0xff] }
   0x8   :  { %67 = vmatpush.msra.mxu0 %v41_v1  ;;  %v83_v8 = vld [vmem:[%s394_s3 + $0x50] sm:$0xff]  ;;  %v82_v9 = vld [vmem:[%s394_s3 + $0x48] sm:$0xff]  ;;  %v81_v10 = vld [vmem:[%s394_s3 + $0x40] sm:$0xff] }
   0x9   :  { %172 = vmatmul.msk.f32.vlgmr.msra.gmra.mxu0 %vm48_vm0, %v43_v2  ;;  %94 = vmatpush.msra.mxu1 %v87_v4  ;;  %v80_v11 = vld [vmem:[%s394_s3 + $0x38] sm:$0xff]  ;;  %v79_v12 = vld [vmem:[%s394_s3 + $0x30] sm:$0xff]  ;;  %v78_v13 = vld [vmem:[%s394_s3 + $0x28] sm:$0xff] }
   0xa   :  { %v77_v14 = vld [vmem:[%s394_s3 + $0x20] sm:$0xff]  ;;  %v76_v15 = vld [vmem:[%s394_s3 + $0x18] sm:$0xff]  ;;  %v75_v16 = vld [vmem:[%s394_s3 + $0x10] sm:$0xff] }
   0xb   :  { %95 = vmatpush.msra.mxu1 %v86_v5  ;;  %v74_v17 = vld [vmem:[%s394_s3 + $0x8] sm:$0xff]  ;;  %v73_v18 = vld [vmem:[%s394_s3] sm:$0xff]  ;;  %v129_v19 = vld [vmem:[%s396_s5 + $0x78] sm:$0xff] }
   0xc   :  { %v128_v20 = vld [vmem:[%s396_s5 + $0x70] sm:$0xff]  ;;  %134 = vmatpush.msra.mxu2 %v129_v19  ;;  %v127_v21 = vld [vmem:[%s396_s5 + $0x68] sm:$0xff]  ;;  %v126_v22 = vld [vmem:[%s396_s5 + $0x60] sm:$0xff] }
   0xd   :  { %96 = vmatpush.msra.mxu1 %v85_v6  ;;  %v125_v23 = vld [vmem:[%s396_s5 + $0x58] sm:$0xff]  ;;  %v124_v24 = vld [vmem:[%s396_s5 + $0x50] sm:$0xff]  ;;  %v123_v25 = vld [vmem:[%s396_s5 + $0x48] sm:$0xff] }
   0xe   :  { %135 = vmatpush.msra.mxu2 %v128_v20  ;;  %v122_v26 = vld [vmem:[%s396_s5 + $0x40] sm:$0xff]  ;;  %v121_v27 = vld [vmem:[%s396_s5 + $0x38] sm:$0xff]  ;;  %v120_v28 = vld [vmem:[%s396_s5 + $0x30] sm:$0xff] }
   0xf   :  { %97 = vmatpush.msra.mxu1 %v84_v7  ;;  %v119_v29 = vld [vmem:[%s396_s5 + $0x28] sm:$0xff]  ;;  %v118_v30 = vld [vmem:[%s396_s5 + $0x20] sm:$0xff]  ;;  %v117_v31 = vld [vmem:[%s396_s5 + $0x18] sm:$0xff] }
  0x10   :  { %136 = vmatpush.msra.mxu2 %v127_v21  ;;  %v175_v32 = vld [vmem:[%s393_s2] ss:$0 sm:$0xff]  ;;  %v116_v36 = vld [vmem:[%s396_s5 + $0x10] sm:$0xff]  ;;  %v115_v37 = vld [vmem:[%s396_s5 + $0x8] sm:$0xff] }
  0x11   :  { %98 = vmatpush.msra.mxu1 %v83_v8  ;;  %v114_v38 = vld [vmem:[%s396_s5] sm:$0xff] }
  0x12   :  { %137 = vmatpush.msra.mxu2 %v126_v22  ;;  %v176_v39 = vld [vmem:[%s395_s4] ss:$0 sm:$0xff] }
  0x13   :  { %99 = vmatpush.msra.mxu1 %v82_v9  ;;  %v177_v43 = vld [vmem:[%s397_s6] ss:$0 sm:$0xff] }
  0x14   :  { %138 = vmatpush.msra.mxu2 %v125_v23 }
  0x15   :  { %100 = vmatpush.msra.mxu1 %v81_v10 }
  0x16   :  { %139 = vmatpush.msra.mxu2 %v124_v24 }
  0x17   :  { %101 = vmatpush.msra.mxu1 %v80_v11 }
  0x18   :  { %140 = vmatpush.msra.mxu2 %v123_v25 }
  0x19   :  { %102 = vmatpush.msra.mxu1 %v79_v12 }
  0x1a   :  { %141 = vmatpush.msra.mxu2 %v122_v26 }
  0x1b   :  { %103 = vmatpush.msra.mxu1 %v78_v13 }
  0x1c   :  { %142 = vmatpush.msra.mxu2 %v121_v27 }
  0x1d   :  { %104 = vmatpush.msra.mxu1 %v77_v14 }
  0x1e   :  { %143 = vmatpush.msra.mxu2 %v120_v28 }
  0x1f   :  { %105 = vmatpush.msra.mxu1 %v76_v15 }
  0x20   :  { %144 = vmatpush.msra.mxu2 %v119_v29 }
  0x21   :  { %106 = vmatpush.msra.mxu1 %v75_v16 }
  0x22   :  { %145 = vmatpush.msra.mxu2 %v118_v30 }
  0x23   :  { %107 = vmatpush.msra.mxu1 %v74_v17 }
  0x24   :  { %146 = vmatpush.msra.mxu2 %v117_v31 }
  0x25   :  { %108 = vmatpush.msra.mxu1 %v73_v18 }
  0x26   :  { %147 = vmatpush.msra.mxu2 %v116_v36 }
  0x28   :  { %148 = vmatpush.msra.mxu2 %v115_v37 }
  0x2a   :  { %149 = vmatpush.msra.mxu2 %v114_v38 }
  0x86   :  { %v69_v33 = vpop.f32.mrf.mxu0 }
  0x87   :  { %v70_v34 = vadd.f32 %v175_v32, %v69_v33 }
  0x89   :  { %v72_v35 = vmax.f32 %v70_v34, 0.0 }
  0x8b   :  { %109 = vmatmul.f32.vlgmr.msra.gmra.mxu1 %v72_v35 }
 0x108   :  { %v110_v40 = vpop.f32.mrf.mxu1 }
 0x109   :  { %v111_v41 = vadd.f32 %v176_v39, %v110_v40 }
 0x10b   :  { %v113_v42 = vmax.f32 %v111_v41, 0.0 }
 0x10d   :  { %150 = vmatmul.f32.vlgmr.msra.gmra.mxu2 %v113_v42 }
 0x190   :  { %v151_v44 = vpop.f32.mrf.mxu2 }
 0x191   :  { %v152_v45 = vadd.f32 %v177_v43, %v151_v44 }
 0x193   :  { %154 = vst.msk [vmem:[#allocation5] sm:$0xff] %vm48_vm0, %v152_v45 }
 0x194   :  { %165 = dma.vmem_to_hbm [thread:$0]  %s161_s26, 128, %s163_s29, [#allocation4]  }
 0x195   :  { %228 = dma.done.wait [#allocation4], 128  }
 0x196   :  { %229 = vsyncadd [#allocation4], 4294967168 }
 0x197   :  { %170 = vsyncpa [#allocation3], 1 }
 0x198   :  { %171 = vsyncpa [#allocation4], 1 }

// kernel: tpu_custom_call.1
= control target key start
LH: loop header
LB: loop body
LE: loop exit
PB: predicated region body
PF: predicated region fallthrough
CT: control target
= control target key end

     0   :  { %12 = vsyncpa [#allocation3], 0  ;;  %s391_s0 = inlined_call_operand.hbm [shape: f32[8,16], index: 0, kind: input, shape index: {}]   ;;  %s392_s1 = inlined_call_operand.vmem [shape: f32[16,128], index: 1, kind: input, shape index: {}]   ;;  %s393_s2 = inlined_call_operand.vmem [shape: f32[1,128], index: 2, kind: input, shape index: {}]   ;;  %s394_s3 = inlined_call_operand.vmem [shape: f32[128,128], index: 3, kind: input, shape index: {}]   ;;  %s395_s4 = inlined_call_operand.vmem [shape: f32[1,128], index: 4, kind: input, shape index: {}]   ;;  %s396_s5 = inlined_call_operand.vmem [shape: f32[128,16], index: 5, kind: input, shape index: {}]   ;;  %s397_s6 = inlined_call_operand.vmem [shape: f32[1,16], index: 6, kind: input, shape index: {}]   ;;  %s398_s7 = inlined_call_operand.hbm [shape: f32[8,16], index: 7, kind: output, shape index: {}]  }
   0x1   :  { %13 = vsyncpa [#allocation4], 0  ;;  %s19_s26 = sshll.u32 %s391_s0, 4  ;;  %s230_s27 = smov [#allocation2]   ;;  %s20_s26 = int_to_ptr.hbm [resolvable:$true] %s19_s26 }
   0x2   :  { %s21_s28 = sshll.u32 %s230_s27, 4  ;;  %s22_s28 = int_to_ptr.vmem [resolvable:$true] %s21_s28 }
   0x3   :  { %24 = dma.hbm_to_vmem [thread:$0]  %s20_s26, 128, %s22_s28, [#allocation3]  }
   0x4   :  { %226 = dma.done.wait [#allocation3], 128  }
   0x5   :  { %227 = vsyncadd [#allocation3], 4294967168  ;;  %v42_v0 = vld [vmem:[%s392_s1 + $0x8] sm:$0xff]  ;;  %v41_v1 = vld [vmem:[%s392_s1] sm:$0xff]  ;;  %vm48_vm0 = vcmask 130048   ;;  %s231_s25 = smov [#allocation5]  }
   0x6   :  { %66 = vmatpush.msra.mxu0 %v42_v0  ;;  %v43_v2 = vld [vmem:[#allocation2] sm:$0xff]  ;;  %v88_v3 = vld [vmem:[%s394_s3 + $0x78] sm:$0xff]  ;;  %v87_v4 = vld [vmem:[%s394_s3 + $0x70] sm:$0xff]  ;;  %s160_s26 = sshll.u32 %s231_s25, 4  ;;  %s162_s29 = sshll.u32 %s398_s7, 4  ;;  %s161_s26 = int_to_ptr.vmem [resolvable:$true] %s160_s26  ;;  %s163_s29 = int_to_ptr.hbm [resolvable:$true] %s162_s29 }
   0x7   :  { %93 = vmatpush.msra.mxu1 %v88_v3  ;;  %v86_v5 = vld [vmem:[%s394_s3 + $0x68] sm:$0xff]  ;;  %v85_v6 = vld [vmem:[%s394_s3 + $0x60] sm:$0xff]  ;;  %v84_v7 = vld [vmem:[%s394_s3 + $0x58] sm:$0xff] }
   0x8   :  { %67 = vmatpush.msra.mxu0 %v41_v1  ;;  %v83_v8 = vld [vmem:[%s394_s3 + $0x50] sm:$0xff]  ;;  %v82_v9 = vld [vmem:[%s394_s3 + $0x48] sm:$0xff]  ;;  %v81_v10 = vld [vmem:[%s394_s3 + $0x40] sm:$0xff] }
   0x9   :  { %172 = vmatmul.msk.f32.vlgmr.msra.gmra.mxu0 %vm48_vm0, %v43_v2  ;;  %94 = vmatpush.msra.mxu1 %v87_v4  ;;  %v80_v11 = vld [vmem:[%s394_s3 + $0x38] sm:$0xff]  ;;  %v79_v12 = vld [vmem:[%s394_s3 + $0x30] sm:$0xff]  ;;  %v78_v13 = vld [vmem:[%s394_s3 + $0x28] sm:$0xff] }
   0xa   :  { %v77_v14 = vld [vmem:[%s394_s3 + $0x20] sm:$0xff]  ;;  %v76_v15 = vld [vmem:[%s394_s3 + $0x18] sm:$0xff]  ;;  %v75_v16 = vld [vmem:[%s394_s3 + $0x10] sm:$0xff] }
   0xb   :  { %95 = vmatpush.msra.mxu1 %v86_v5  ;;  %v74_v17 = vld [vmem:[%s394_s3 + $0x8] sm:$0xff]  ;;  %v73_v18 = vld [vmem:[%s394_s3] sm:$0xff]  ;;  %v129_v19 = vld [vmem:[%s396_s5 + $0x78] sm:$0xff] }
   0xc   :  { %v128_v20 = vld [vmem:[%s396_s5 + $0x70] sm:$0xff]  ;;  %134 = vmatpush.msra.mxu2 %v129_v19  ;;  %v127_v21 = vld [vmem:[%s396_s5 + $0x68] sm:$0xff]  ;;  %v126_v22 = vld [vmem:[%s396_s5 + $0x60] sm:$0xff] }
   0xd   :  { %96 = vmatpush.msra.mxu1 %v85_v6  ;;  %v125_v23 = vld [vmem:[%s396_s5 + $0x58] sm:$0xff]  ;;  %v124_v24 = vld [vmem:[%s396_s5 + $0x50] sm:$0xff]  ;;  %v123_v25 = vld [vmem:[%s396_s5 + $0x48] sm:$0xff] }
   0xe   :  { %135 = vmatpush.msra.mxu2 %v128_v20  ;;  %v122_v26 = vld [vmem:[%s396_s5 + $0x40] sm:$0xff]  ;;  %v121_v27 = vld [vmem:[%s396_s5 + $0x38] sm:$0xff]  ;;  %v120_v28 = vld [vmem:[%s396_s5 + $0x30] sm:$0xff] }
   0xf   :  { %97 = vmatpush.msra.mxu1 %v84_v7  ;;  %v119_v29 = vld [vmem:[%s396_s5 + $0x28] sm:$0xff]  ;;  %v118_v30 = vld [vmem:[%s396_s5 + $0x20] sm:$0xff]  ;;  %v117_v31 = vld [vmem:[%s396_s5 + $0x18] sm:$0xff] }
  0x10   :  { %136 = vmatpush.msra.mxu2 %v127_v21  ;;  %v175_v32 = vld [vmem:[%s393_s2] ss:$0 sm:$0xff]  ;;  %v116_v36 = vld [vmem:[%s396_s5 + $0x10] sm:$0xff]  ;;  %v115_v37 = vld [vmem:[%s396_s5 + $0x8] sm:$0xff] }
  0x11   :  { %98 = vmatpush.msra.mxu1 %v83_v8  ;;  %v114_v38 = vld [vmem:[%s396_s5] sm:$0xff] }
  0x12   :  { %137 = vmatpush.msra.mxu2 %v126_v22  ;;  %v176_v39 = vld [vmem:[%s395_s4] ss:$0 sm:$0xff] }
  0x13   :  { %99 = vmatpush.msra.mxu1 %v82_v9  ;;  %v177_v43 = vld [vmem:[%s397_s6] ss:$0 sm:$0xff] }
  0x14   :  { %138 = vmatpush.msra.mxu2 %v125_v23 }
  0x15   :  { %100 = vmatpush.msra.mxu1 %v81_v10 }
  0x16   :  { %139 = vmatpush.msra.mxu2 %v124_v24 }
  0x17   :  { %101 = vmatpush.msra.mxu1 %v80_v11 }
  0x18   :  { %140 = vmatpush.msra.mxu2 %v123_v25 }
  0x19   :  { %102 = vmatpush.msra.mxu1 %v79_v12 }
  0x1a   :  { %141 = vmatpush.msra.mxu2 %v122_v26 }
  0x1b   :  { %103 = vmatpush.msra.mxu1 %v78_v13 }
  0x1c   :  { %142 = vmatpush.msra.mxu2 %v121_v27 }
  0x1d   :  { %104 = vmatpush.msra.mxu1 %v77_v14 }
  0x1e   :  { %143 = vmatpush.msra.mxu2 %v120_v28 }
  0x1f   :  { %105 = vmatpush.msra.mxu1 %v76_v15 }
  0x20   :  { %144 = vmatpush.msra.mxu2 %v119_v29 }
  0x21   :  { %106 = vmatpush.msra.mxu1 %v75_v16 }
  0x22   :  { %145 = vmatpush.msra.mxu2 %v118_v30 }
  0x23   :  { %107 = vmatpush.msra.mxu1 %v74_v17 }
  0x24   :  { %146 = vmatpush.msra.mxu2 %v117_v31 }
  0x25   :  { %108 = vmatpush.msra.mxu1 %v73_v18 }
  0x26   :  { %147 = vmatpush.msra.mxu2 %v116_v36 }
  0x28   :  { %148 = vmatpush.msra.mxu2 %v115_v37 }
  0x2a   :  { %149 = vmatpush.msra.mxu2 %v114_v38 }
  0x86   :  { %v69_v33 = vpop.f32.mrf.mxu0 }
  0x87   :  { %v70_v34 = vadd.f32 %v175_v32, %v69_v33 }
  0x89   :  { %v72_v35 = vmax.f32 %v70_v34, 0.0 }
  0x8b   :  { %109 = vmatmul.f32.vlgmr.msra.gmra.mxu1 %v72_v35 }
 0x108   :  { %v110_v40 = vpop.f32.mrf.mxu1 }
 0x109   :  { %v111_v41 = vadd.f32 %v176_v39, %v110_v40 }
 0x10b   :  { %v113_v42 = vmax.f32 %v111_v41, 0.0 }
 0x10d   :  { %150 = vmatmul.f32.vlgmr.msra.gmra.mxu2 %v113_v42 }
 0x190   :  { %v151_v44 = vpop.f32.mrf.mxu2 }
 0x191   :  { %v152_v45 = vadd.f32 %v177_v43, %v151_v44 }
 0x193   :  { %154 = vst.msk [vmem:[#allocation5] sm:$0xff] %vm48_vm0, %v152_v45 }
 0x194   :  { %165 = dma.vmem_to_hbm [thread:$0]  %s161_s26, 128, %s163_s29, [#allocation4]  }
 0x195   :  { %228 = dma.done.wait [#allocation4], 128  }
 0x196   :  { %229 = vsyncadd [#allocation4], 4294967168 }
 0x197   :  { %170 = vsyncpa [#allocation3], 1 }
 0x198   :  { %171 = vsyncpa [#allocation4], 1 }

</bundles_post_ra>
